<compile_context>
chip_gen: v7x
topology: tpu7x:2x2x1
jax: 0.10.0
libtpu: 0.0.40
codegen_flags: <defaults>
</compile_context>

<pallas_src>
from functools import partial

import jax
import jax.numpy as jnp
from jax.experimental import pallas as pl
from jax.experimental.pallas import tpu as pltpu


def _mha_kernel(num_heads, head_dim, mask,
                q_ref, k_ref, v_ref,
                wqkv_ref, bqkv_ref, wo_ref, bo_ref,
                out_ref):
    # blocks: q/k/v (1, S, E); wqkv (3H, E, L); bqkv (3H, 1, L);
    #         wo (H, L, A_pad); bo (1, A_pad); out (1, S, A_pad)
    H, L = num_heads, head_dim
    S = q_ref.shape[1]
    E = q_ref.shape[2]

    xq = q_ref[0]                      # (S, E)
    xk = k_ref[0]
    xv = v_ref[0]

    # --- fused, head-batched Q/K/V projection: one batched matmul over 3H weight slabs ---
    x3 = jnp.concatenate([
        jnp.broadcast_to(xq[None], (H, S, E)),
        jnp.broadcast_to(xk[None], (H, S, E)),
        jnp.broadcast_to(xv[None], (H, S, E)),
    ], axis=0)                                                    # (3H, S, E)
    proj = jnp.einsum("nse,nel->nsl", x3, wqkv_ref[...],
                      preferred_element_type=jnp.float32) + bqkv_ref[...]   # (3H, S, L)

    qh = proj[0:H]                     # (H, S, L); 1/sqrt(L) already folded into Wq/bq
    kh = proj[H:2 * H]
    vh = proj[2 * H:3 * H]

    # --- all heads at once: batched contraction, no explicit transpose ---
    s = jnp.einsum("hqd,hkd->hqk", qh, kh,
                   preferred_element_type=jnp.float32)            # (H, S, S)

    if mask:
        # Faithful to the module: filter = tril(scores); scores.masked_fill(filter == 0, -inf)
        ri = jax.lax.broadcasted_iota(jnp.int32, (S, S), 0)
        ci = jax.lax.broadcasted_iota(jnp.int32, (S, S), 1)
        tril = (ri >= ci)[None, :, :]                             # (1, S, S)
        filt = jnp.where(tril, s, 0.0)
        s = jnp.where(filt == 0.0, -jnp.inf, s)

    # stable softmax in f32; denominator reciprocal goes to the (otherwise idle) EUP slot
    s = s - jnp.max(s, axis=-1, keepdims=True)
    p = jnp.exp(s)
    p = p * pl.reciprocal(jnp.sum(p, axis=-1, keepdims=True), approx=True)

    ctx = jnp.einsum("hqk,hkd->hqd", p, vh,
                     preferred_element_type=jnp.float32)          # (H, S, L)

    # --- output projection with the head concat folded into the weight layout:
    #     concat_h(ctx_h) @ Wo  ==  sum_h ctx_h @ Wo[h]  (no lane concatenate needed) ---
    out = jnp.sum(jnp.einsum("hsl,hla->hsa", ctx, wo_ref[...],
                             preferred_element_type=jnp.float32), axis=0) + bo_ref[...]
    out_ref[0] = out.astype(out_ref.dtype)                        # lane-dense (S, A_pad) store


def multi_head_attention(query, key, value, params, num_heads, mask=False):
    B, S, E = query.shape
    A = params["wq"].shape[1]
    assert A % num_heads == 0
    H = num_heads
    L = A // num_heads
    scale = 1.0 / (L ** 0.5)           # PyTorch: k.shape[-1] ** 0.5 where k is (B,H,S,L)

    # ---- one-time wrapper-side weight re-layout (pure JAX, outside the kernel) ----
    def to_heads(w, b, s_=1.0):
        wh = (w * s_).reshape(E, H, L).transpose(1, 0, 2)         # (H, E, L)
        bh = (b * s_).reshape(1, H, L).transpose(1, 0, 2)         # (H, 1, L)
        return wh, bh

    wq_h, bq_h = to_heads(params["wq"], params["bq"], scale)      # scale folded into Q proj
    wk_h, bk_h = to_heads(params["wk"], params["bk"])
    wv_h, bv_h = to_heads(params["wv"], params["bv"])
    w_qkv = jnp.concatenate([wq_h, wk_h, wv_h], axis=0)           # (3H, E, L)
    b_qkv = jnp.concatenate([bq_h, bk_h, bv_h], axis=0)           # (3H, 1, L)

    # pad the output projection to a lane-dense width (multiple of 128) -> unmasked stores
    A_pad = ((A + 127) // 128) * 128
    wo = params["wo"]
    bo = params["bo"]
    if A_pad != A:
        wo = jnp.pad(wo, ((0, 0), (0, A_pad - A)))
        bo = jnp.pad(bo, ((0, 0), (0, A_pad - A)))
    wo_h = wo.reshape(H, L, A_pad)                                # (H, L, A_pad)

    kernel = partial(_mha_kernel, H, L, mask)

    out = pl.pallas_call(
        kernel,
        out_shape=jax.ShapeDtypeStruct((B, S, A_pad), jnp.float32),
        grid=(B,),
        in_specs=[
            pl.BlockSpec((1, S, E), lambda b: (b, 0, 0)),         # query
            pl.BlockSpec((1, S, E), lambda b: (b, 0, 0)),         # key
            pl.BlockSpec((1, S, E), lambda b: (b, 0, 0)),         # value
            pl.BlockSpec((3 * H, E, L), lambda b: (0, 0, 0)),     # fused QKV weights (resident)
            pl.BlockSpec((3 * H, 1, L), lambda b: (0, 0, 0)),     # fused QKV biases
            pl.BlockSpec((H, L, A_pad), lambda b: (0, 0, 0)),     # output weights (head-split)
            pl.BlockSpec((1, A_pad), lambda b: (0, 0)),           # output bias
        ],
        out_specs=pl.BlockSpec((1, S, A_pad), lambda b: (b, 0, 0)),
        compiler_params=pltpu.CompilerParams(
            dimension_semantics=("parallel",),
            vmem_limit_bytes=32 * 1024 * 1024,
        ),
    )(query, key, value, w_qkv, b_qkv, wo_h, bo)

    return out[..., :A] if A_pad != A else out


def reference_mha(query, key, value, params, num_heads, mask=False):
    """Pure-JAX reference mirroring the PyTorch module exactly."""
    B, S, E = query.shape
    A = params["wq"].shape[1]
    L = A // num_heads
    q = query @ params["wq"] + params["bq"]
    k = key @ params["wk"] + params["bk"]
    v = value @ params["wv"] + params["bv"]

    def split(x):
        return x.reshape(B, S, num_heads, L).transpose(0, 2, 1, 3)    # (B,H,S,L)

    qh, kh, vh = split(q), split(k), split(v)
    scores = jnp.einsum("bhqd,bhkd->bhqk", qh, kh) / (L ** 0.5)
    if mask:
        filt = jnp.tril(scores)                                       # tril on last 2 dims
        scores = jnp.where(filt == 0, -jnp.inf, scores)
    p = jax.nn.softmax(scores, axis=-1)
    o = jnp.einsum("bhqk,bhkd->bhqd", p, vh)
    o = o.transpose(0, 2, 1, 3).reshape(B, S, A)
    return o @ params["wo"] + params["bo"]


def init_params(key, embedding_dim, attention_dim):
    """Deterministic synthetic init (shapes match nn.Linear layers of the module)."""
    ks = jax.random.split(key, 8)

    def lin(kw, kb, fan_in, fan_out):
        bound = 1.0 / (fan_in ** 0.5)
        w = jax.random.uniform(kw, (fan_in, fan_out), jnp.float32, -bound, bound)
        b = jax.random.uniform(kb, (1, fan_out), jnp.float32, -bound, bound)
        return w, b

    wq, bq = lin(ks[0], ks[1], embedding_dim, attention_dim)
    wk, bk = lin(ks[2], ks[3], embedding_dim, attention_dim)
    wv, bv = lin(ks[4], ks[5], embedding_dim, attention_dim)
    wo, bo = lin(ks[6], ks[7], attention_dim, attention_dim)
    return dict(wq=wq, bq=bq, wk=wk, bk=bk, wv=wv, bv=bv, wo=wo, bo=bo)


if __name__ == "__main__":
    B, S, E = 2, 8, 32           # batch, sequence_length, embedding_dim
    A, H = 32, 4                 # attention_dim, num_heads (head_dim = 8)

    root = jax.random.PRNGKey(0)
    k_q, k_k, k_v, k_p = jax.random.split(root, 4)
    query = jax.random.normal(k_q, (B, S, E), jnp.float32)
    key_ = jax.random.normal(k_k, (B, S, E), jnp.float32)
    value = jax.random.normal(k_v, (B, S, E), jnp.float32)
    params = init_params(k_p, E, A)

    # Tolerance is 5e-3 (rather than 1e-5) only because the softmax denominator uses the
    # EUP approximate reciprocal; all other arithmetic is exact f32.
    TOL = 5e-3

    # mask=False (module default)
    out = jax.block_until_ready(multi_head_attention(query, key_, value, params, num_heads=H))
    ref = reference_mha(query, key_, value, params, num_heads=H)
    assert out.shape == (B, S, A)
    assert jnp.allclose(out, ref, atol=TOL, rtol=TOL), "mismatch vs reference (mask=False)"

    # mask=True (causal path, including the module's masked_fill(filter == 0) quirk)
    out_m = jax.block_until_ready(
        multi_head_attention(query, key_, value, params, num_heads=H, mask=True))
    ref_m = reference_mha(query, key_, value, params, num_heads=H, mask=True)
    assert jnp.allclose(out_m, ref_m, atol=TOL, rtol=TOL), "mismatch vs reference (mask=True)"

    print("KERNEL_OK")
</pallas_src>

<mosaic_0001>
module attributes {stable_mosaic.version = 11 : i64} {
  func.func @_mha_kernel(%arg0: i32, %arg1: memref<1x8x32xf32, #tpu.memory_space<vmem>>, %arg2: memref<1x8x32xf32, #tpu.memory_space<vmem>>, %arg3: memref<1x8x32xf32, #tpu.memory_space<vmem>>, %arg4: memref<12x32x8xf32, #tpu.memory_space<vmem>>, %arg5: memref<12x1x8xf32, #tpu.memory_space<vmem>>, %arg6: memref<4x8x128xf32, #tpu.memory_space<vmem>>, %arg7: memref<1x128xf32, #tpu.memory_space<vmem>>, %arg8: memref<1x8x128xf32, #tpu.memory_space<vmem>>) attributes {dimension_semantics = [#tpu.dimension_semantics<parallel>], iteration_bounds = array<i64: 2>, scalar_prefetch = 0 : i64, scratch_operands = 0 : i64, tpu.core_type = #tpu.core_type<tc>, window_params = [{transform_indices = @transform_0, window_bounds = array<i64: 1, 8, 32>}, {transform_indices = @transform_1, window_bounds = array<i64: 1, 8, 32>}, {transform_indices = @transform_2, window_bounds = array<i64: 1, 8, 32>}, {pipeline_mode = #tpu.pipeline_mode<synchronous>, transform_indices = @transform_3, window_bounds = array<i64: 12, 32, 8>}, {pipeline_mode = #tpu.pipeline_mode<synchronous>, transform_indices = @transform_4, window_bounds = array<i64: 12, 1, 8>}, {pipeline_mode = #tpu.pipeline_mode<synchronous>, transform_indices = @transform_5, window_bounds = array<i64: 4, 8, 128>}, {pipeline_mode = #tpu.pipeline_mode<synchronous>, transform_indices = @transform_6, window_bounds = array<i64: 1, 128>}, {transform_indices = @transform_7, window_bounds = array<i64: 1, 8, 128>}]} {
    %c0 = arith.constant 0 : index
    %c0_0 = arith.constant 0 : index
    %c0_1 = arith.constant 0 : index
    %0 = vector.load %arg1[%c0, %c0_0, %c0_1] : memref<1x8x32xf32, #tpu.memory_space<vmem>>, vector<1x8x32xf32>
    %1 = vector.shape_cast %0 : vector<1x8x32xf32> to vector<8x32xf32>
    %c0_2 = arith.constant 0 : index
    %c0_3 = arith.constant 0 : index
    %c0_4 = arith.constant 0 : index
    %2 = vector.load %arg2[%c0_2, %c0_3, %c0_4] : memref<1x8x32xf32, #tpu.memory_space<vmem>>, vector<1x8x32xf32>
    %3 = vector.shape_cast %2 : vector<1x8x32xf32> to vector<8x32xf32>
    %c0_5 = arith.constant 0 : index
    %c0_6 = arith.constant 0 : index
    %c0_7 = arith.constant 0 : index
    %4 = vector.load %arg3[%c0_5, %c0_6, %c0_7] : memref<1x8x32xf32, #tpu.memory_space<vmem>>, vector<1x8x32xf32>
    %5 = vector.shape_cast %4 : vector<1x8x32xf32> to vector<8x32xf32>
    %6 = vector.shape_cast %1 : vector<8x32xf32> to vector<1x8x32xf32>
    %7 = vector.shape_cast %6 : vector<1x8x32xf32> to vector<1x8x32xf32>
    %8 = vector.broadcast %7 : vector<1x8x32xf32> to vector<4x8x32xf32>
    %9 = vector.shape_cast %3 : vector<8x32xf32> to vector<1x8x32xf32>
    %10 = vector.shape_cast %9 : vector<1x8x32xf32> to vector<1x8x32xf32>
    %11 = vector.broadcast %10 : vector<1x8x32xf32> to vector<4x8x32xf32>
    %12 = vector.shape_cast %5 : vector<8x32xf32> to vector<1x8x32xf32>
    %13 = vector.shape_cast %12 : vector<1x8x32xf32> to vector<1x8x32xf32>
    %14 = vector.broadcast %13 : vector<1x8x32xf32> to vector<4x8x32xf32>
    %15 = tpu.concatenate %8, %11, %14 in 0 : vector<4x8x32xf32>, vector<4x8x32xf32>, vector<4x8x32xf32> -> vector<12x8x32xf32>
    %c0_8 = arith.constant 0 : index
    %c0_9 = arith.constant 0 : index
    %c0_10 = arith.constant 0 : index
    %16 = vector.load %arg4[%c0_8, %c0_9, %c0_10] : memref<12x32x8xf32, #tpu.memory_space<vmem>>, vector<12x32x8xf32>
    "tpu.trace_start"() <{level = 10 : i32, message = "nse,nel->nsl"}> : () -> ()
    %cst = arith.constant dense<0.000000e+00> : vector<12x8x8xf32>
    %17 = tpu.matmul %15, %16, %cst {dimension_numbers = #tpu.dot_dimension_numbers<[2], [1], [1], [2], [0, 0, 0, 1, 1, 2], [0], [0]>} : vector<12x8x32xf32>, vector<12x32x8xf32>, vector<12x8x8xf32> -> vector<12x8x8xf32>
    "tpu.trace_stop"() : () -> ()
    %c0_11 = arith.constant 0 : index
    %c0_12 = arith.constant 0 : index
    %c0_13 = arith.constant 0 : index
    %18 = vector.load %arg5[%c0_11, %c0_12, %c0_13] : memref<12x1x8xf32, #tpu.memory_space<vmem>>, vector<12x1x8xf32>
    %19 = vector.broadcast %18 : vector<12x1x8xf32> to vector<12x8x8xf32>
    %20 = arith.addf %17, %19 : vector<12x8x8xf32>
    %21 = vector.extract_strided_slice %20 {offsets = [0, 0, 0], sizes = [4, 8, 8], strides = [1, 1, 1]} : vector<12x8x8xf32> to vector<4x8x8xf32>
    %22 = vector.extract_strided_slice %20 {offsets = [4, 0, 0], sizes = [4, 8, 8], strides = [1, 1, 1]} : vector<12x8x8xf32> to vector<4x8x8xf32>
    %23 = vector.extract_strided_slice %20 {offsets = [8, 0, 0], sizes = [4, 8, 8], strides = [1, 1, 1]} : vector<12x8x8xf32> to vector<4x8x8xf32>
    "tpu.trace_start"() <{level = 10 : i32, message = "hqd,hkd->hqk"}> : () -> ()
    %cst_14 = arith.constant dense<0.000000e+00> : vector<4x8x8xf32>
    %24 = tpu.matmul %21, %22, %cst_14 {dimension_numbers = #tpu.dot_dimension_numbers<[2], [2], [1], [1], [0, 0, 0, 1, 1, 1], [0], [0]>} : vector<4x8x8xf32>, vector<4x8x8xf32>, vector<4x8x8xf32> -> vector<4x8x8xf32>
    "tpu.trace_stop"() : () -> ()
    %cst_15 = arith.constant dense<0xFF800000> : vector<4x8xf32>
    %25 = vector.multi_reduction <maximumf>, %24, %cst_15 [2] : vector<4x8x8xf32> to vector<4x8xf32>
    %26 = vector.shape_cast %25 : vector<4x8xf32> to vector<4x8x1xf32>
    %27 = vector.broadcast %26 : vector<4x8x1xf32> to vector<4x8x8xf32>
    %28 = arith.subf %24, %27 : vector<4x8x8xf32>
    %29 = math.exp %28 : vector<4x8x8xf32>
    %cst_16 = arith.constant dense<0.000000e+00> : vector<4x8xf32>
    %30 = vector.multi_reduction <add>, %29, %cst_16 [2] : vector<4x8x8xf32> to vector<4x8xf32>
    %31 = vector.shape_cast %30 : vector<4x8xf32> to vector<4x8x1xf32>
    %32 = tpu.reciprocal %31 {approx = true} : vector<4x8x1xf32> -> vector<4x8x1xf32>
    %33 = vector.broadcast %32 : vector<4x8x1xf32> to vector<4x8x8xf32>
    %34 = arith.mulf %29, %33 : vector<4x8x8xf32>
    "tpu.trace_start"() <{level = 10 : i32, message = "hqk,hkd->hqd"}> : () -> ()
    %cst_17 = arith.constant dense<0.000000e+00> : vector<4x8x8xf32>
    %35 = tpu.matmul %34, %23, %cst_17 {dimension_numbers = #tpu.dot_dimension_numbers<[2], [1], [1], [2], [0, 0, 0, 1, 1, 2], [0], [0]>} : vector<4x8x8xf32>, vector<4x8x8xf32>, vector<4x8x8xf32> -> vector<4x8x8xf32>
    "tpu.trace_stop"() : () -> ()
    %c0_18 = arith.constant 0 : index
    %c0_19 = arith.constant 0 : index
    %c0_20 = arith.constant 0 : index
    %36 = vector.load %arg6[%c0_18, %c0_19, %c0_20] : memref<4x8x128xf32, #tpu.memory_space<vmem>>, vector<4x8x128xf32>
    "tpu.trace_start"() <{level = 10 : i32, message = "hsl,hla->hsa"}> : () -> ()
    %cst_21 = arith.constant dense<0.000000e+00> : vector<4x8x128xf32>
    %37 = tpu.matmul %35, %36, %cst_21 {dimension_numbers = #tpu.dot_dimension_numbers<[2], [1], [1], [2], [0, 0, 0, 1, 1, 2], [0], [0]>} : vector<4x8x8xf32>, vector<4x8x128xf32>, vector<4x8x128xf32> -> vector<4x8x128xf32>
    "tpu.trace_stop"() : () -> ()
    %cst_22 = arith.constant dense<0.000000e+00> : vector<8x128xf32>
    %38 = vector.multi_reduction <add>, %37, %cst_22 [0] : vector<4x8x128xf32> to vector<8x128xf32>
    %c0_23 = arith.constant 0 : index
    %c0_24 = arith.constant 0 : index
    %39 = vector.load %arg7[%c0_23, %c0_24] : memref<1x128xf32, #tpu.memory_space<vmem>>, vector<1x128xf32>
    %40 = vector.broadcast %39 : vector<1x128xf32> to vector<8x128xf32>
    %41 = arith.addf %38, %40 : vector<8x128xf32>
    %c0_25 = arith.constant 0 : index
    %c0_26 = arith.constant 0 : index
    %c0_27 = arith.constant 0 : index
    %42 = vector.load %arg8[%c0_25, %c0_26, %c0_27] : memref<1x8x128xf32, #tpu.memory_space<vmem>>, vector<1x8x128xf32>
    %43 = vector.shape_cast %42 : vector<1x8x128xf32> to vector<8x128xf32>
    %44 = vector.shape_cast %41 : vector<8x128xf32> to vector<1x8x128xf32>
    tpu.vector_store %arg8[%c0_25, %c0_26, %c0_27], %44 {strides = array<i32>} : memref<1x8x128xf32, #tpu.memory_space<vmem>>, vector<1x8x128xf32>,
    return
  }
  func.func @transform_0(%arg0: i32) -> (i32, i32, i32) {
    %c0_i32 = arith.constant 0 : i32
    %c0_i32_0 = arith.constant 0 : i32
    %c0_i32_1 = arith.constant 0 : i32
    return %arg0, %c0_i32, %c0_i32_0 : i32, i32, i32
  }
  func.func @transform_1(%arg0: i32) -> (i32, i32, i32) {
    %c0_i32 = arith.constant 0 : i32
    %c0_i32_0 = arith.constant 0 : i32
    %c0_i32_1 = arith.constant 0 : i32
    return %arg0, %c0_i32, %c0_i32_0 : i32, i32, i32
  }
  func.func @transform_2(%arg0: i32) -> (i32, i32, i32) {
    %c0_i32 = arith.constant 0 : i32
    %c0_i32_0 = arith.constant 0 : i32
    %c0_i32_1 = arith.constant 0 : i32
    return %arg0, %c0_i32, %c0_i32_0 : i32, i32, i32
  }
  func.func @transform_3(%arg0: i32) -> (i32, i32, i32) {
    %c0_i32 = arith.constant 0 : i32
    %c0_i32_0 = arith.constant 0 : i32
    %c0_i32_1 = arith.constant 0 : i32
    %c0_i32_2 = arith.constant 0 : i32
    return %c0_i32, %c0_i32_0, %c0_i32_1 : i32, i32, i32
  }
  func.func @transform_4(%arg0: i32) -> (i32, i32, i32) {
    %c0_i32 = arith.constant 0 : i32
    %c0_i32_0 = arith.constant 0 : i32
    %c0_i32_1 = arith.constant 0 : i32
    %c0_i32_2 = arith.constant 0 : i32
    return %c0_i32, %c0_i32_0, %c0_i32_1 : i32, i32, i32
  }
  func.func @transform_5(%arg0: i32) -> (i32, i32, i32) {
    %c0_i32 = arith.constant 0 : i32
    %c0_i32_0 = arith.constant 0 : i32
    %c0_i32_1 = arith.constant 0 : i32
    %c0_i32_2 = arith.constant 0 : i32
    return %c0_i32, %c0_i32_0, %c0_i32_1 : i32, i32, i32
  }
  func.func @transform_6(%arg0: i32) -> (i32, i32) {
    %c0_i32 = arith.constant 0 : i32
    %c0_i32_0 = arith.constant 0 : i32
    %c0_i32_1 = arith.constant 0 : i32
    return %c0_i32, %c0_i32_0 : i32, i32
  }
  func.func @transform_7(%arg0: i32) -> (i32, i32, i32) {
    %c0_i32 = arith.constant 0 : i32
    %c0_i32_0 = arith.constant 0 : i32
    %c0_i32_1 = arith.constant 0 : i32
    return %arg0, %c0_i32, %c0_i32_0 : i32, i32, i32
  }
}

</mosaic_0001>

<bundles_post_ra>
// kernel: tpu_custom_call.1
= control target key start
LH: loop header
LB: loop body
LE: loop exit
PB: predicated region body
PF: predicated region fallthrough
CT: control target
= control target key end

     0   :  { %12 = vsyncpa [#allocation3], 0  ;;  %s3335_s0 = inlined_call_operand.vmem [shape: f32[2,8,32], index: 0, kind: input, shape index: {}]   ;;  %s3336_s1 = inlined_call_operand.vmem [shape: f32[2,8,32], index: 1, kind: input, shape index: {}]   ;;  %s3337_s2 = inlined_call_operand.vmem [shape: f32[2,8,32], index: 2, kind: input, shape index: {}]   ;;  %s3338_s3 = inlined_call_operand.vmem [shape: f32[12,32,8], index: 3, kind: input, shape index: {}]   ;;  %s3339_s4 = inlined_call_operand.vmem [shape: f32[12,1,8], index: 4, kind: input, shape index: {}]   ;;  %s3340_s5 = inlined_call_operand.vmem [shape: f32[4,8,128], index: 5, kind: input, shape index: {}]   ;;  %s3341_s6 = inlined_call_operand.vmem [shape: f32[1,128], index: 6, kind: input, shape index: {}]   ;;  %s3342_s7 = inlined_call_operand.hbm [shape: f32[2,8,128], index: 7, kind: output, shape index: {}]  }
   0x1   :  { %14 = vsyncpa [#allocation3 + $0x1], 0  ;;  %s2906_s24 = smov 0   ;;  %s2908_s25 = smov 0  }
   0x2   :  { %s2910_s26 = smov 0   ;;  %s2912_s27 = smov 0  }
   0x3 LB: > { %s2927_s28 = sadd.s32 4294967295, %s2860_s27   ;;  %s2339_s29 = sadd.s32 4294967294, %s2860_s27   ;;  %s2860_s27 = sphi %s2912_s27, %s3348_s27   ;;  %s2856_s26 = sphi %s2910_s26, %s3347_s26   ;;  %s2852_s25 = sphi %s2908_s25, %s3346_s25   ;;  %s2848_s24 = sphi %s2906_s24, %s3345_s24  }
   0x4   : > { %s2931_s30 = sadd.s32 1, %s2860_s27   ;;  %s189_s8 = sadd.s32 1, %s2856_s26 }
   0x5   : > { %s186_s9 = ssub.s32 %s2860_s27, %s2931_s30  ;;  %p199_p0 = scmp.ne.s32.totalorder %s2856_s26, %s2852_s25 }
   0x6   : > { %p187_p1 = scmp.eq.s32.totalorder %s186_s9, 0  ;;  %p200_p2 = scmp.eq.s32.totalorder %s2927_s28, 1 }
   0x7   : > { %p205_p3 = scmp.ne.s32.totalorder %s2852_s25, %s2848_s24  ;;  %p206_p4 = scmp.eq.s32.totalorder %s2339_s29, 1 }
   0x8   : > { %s2942_s10 = scalar_select %p187_p1, %s2856_s26, %s189_s8  }
   0x9   : > { %p2944_p5 = por %p200_p2, %p199_p0  ;;  %p2948_p6 = por %p206_p4, %p205_p3 }
   0xa   : > { %p2342_p7 = scmp.ge.s32.totalorder %s2860_s27, 1  ;;  %p257_p8 = scmp.lt.s32.totalorder %s2860_s27, 3 }
   0xc   : > { %p258_p9 = pnand %p2342_p7, %p257_p8 }
   0xd   : > { %v311_v0 = vld [vmem:[%s3338_s3] sm:$0xff] (!%p258_p9)  ;;  %v312_v1 = vld [vmem:[%s3338_s3 + $0x8] sm:$0xff] (!%p258_p9)  ;;  %v2862_v3 = vmov (!%p258_p9), 0.0|0.0   ;;  %v313_v6 = vld [vmem:[%s3338_s3 + $0x10] sm:$0xff] (!%p258_p9)  ;;  %p296_p10 = scmp.lt.s32.totalorder (!%p258_p9), %s2927_s28, 1  ;;  %vm2863_vm0 = vmmov (!%p258_p9), 0  }
   0xe   : > { %261 = sbr.rel (%p258_p9) target bundleno = 1239 (0x4d7), region = 48  ;;  %v315_v2 = vld [vmem:[%s3338_s3 + $0x20] sm:$0xff] (!%p258_p9)  ;;  %2668 = vmatprep.subr.bf16.mxu0 (!%p258_p9), %v2862_v3  ;;  %2674 = vmatprep.subr.bf16.mxu1 (!%p258_p9), %v2862_v3  ;;  %v2669_v4 = vpack.c.bf16 (!%p258_p9), %v312_v1, %v311_v0  ;;  %v316_v5 = vld [vmem:[%s3338_s3 + $0x28] sm:$0xff] (!%p258_p9)  ;;  %v314_v7 = vld [vmem:[%s3338_s3 + $0x18] sm:$0xff] (!%p258_p9)  ;;  %v2864_v11 = vmov (!%p258_p9), 0.0   ;;  %vm443_vm1 = vcmask (!%p258_p9), 261120  }
   0xf   : > { %v2675_v8 = vpack.c.bf16 (!%p258_p9), %v316_v5, %v315_v2  ;;  %v317_v9 = vld [vmem:[%s3338_s3 + $0x30] sm:$0xff] (!%p258_p9)  ;;  %v318_v10 = vld [vmem:[%s3338_s3 + $0x38] sm:$0xff] (!%p258_p9)  ;;  %2484 = vmatprep.mubr.msk.f32.mxu0 (!%p258_p9), %vm2863_vm0, %v2864_v11  ;;  %2495 = vmatprep.mubr.msk.f32.mxu1 (!%p258_p9), %vm2863_vm0, %v2864_v11  ;;  %v2672_v12 = vpack.c.bf16 (!%p258_p9), %v314_v7, %v313_v6  ;;  %v319_v14 = vld [vmem:[%s3338_s3 + $0x40] sm:$0xff] (!%p258_p9)  ;;  %vm1293_vm2 = vcmask (!%p258_p9), 64512   ;;  %s293_s17 = sand.u32 (!%p258_p9), 1, %s2852_s25   ;;  %s2389_s21 = sshll.u32 (!%p258_p9), %s2927_s28, 7 }
  0x10   : > { %2670 = vmatpush3.bf16.msra.mxu0 (!%p258_p9), %v2669_v4  ;;  %v2678_v13 = vpack.c.bf16 (!%p258_p9), %v318_v10, %v317_v9  ;;  %v320_v15 = vld [vmem:[%s3338_s3 + $0x48] sm:$0xff] (!%p258_p9)  ;;  %v323_v16 = vld [vmem:[%s3338_s3 + $0x60] sm:$0xff] (!%p258_p9)  ;;  %v321_v21 = vld [vmem:[%s3338_s3 + $0x50] sm:$0xff] (!%p258_p9)  ;;  %s2343_s18 = sshll.u32 (!%p258_p9), %s293_s17, 3  ;;  %s3293_s9 = scalar_lea.hbm (!%p258_p9), %s3342_s7, %s2389_s21 }
  0x11   : > { %2676 = vmatpush3.bf16.msra.mxu1 (!%p258_p9), %v2675_v8  ;;  %2671 = vmatprep.subr.bf16.mxu0 (!%p258_p9), %v2862_v3  ;;  %v324_v17 = vld [vmem:[%s3338_s3 + $0x68] sm:$0xff] (!%p258_p9)  ;;  %v2681_v19 = vpack.c.bf16 (!%p258_p9), %v320_v15, %v319_v14  ;;  %v322_v22 = vld [vmem:[%s3338_s3 + $0x58] sm:$0xff] (!%p258_p9)  ;;  %v325_v23 = vld [vmem:[%s3338_s3 + $0x70] sm:$0xff] (!%p258_p9)  ;;  %s295_s22 = scalar_lea.vmem (!%p258_p9), [#allocation2], %s2343_s18 }
  0x12   : > { %2677 = vmatprep.subr.bf16.mxu1 (!%p258_p9), %v2862_v3  ;;  %v2687_v20 = vpack.c.bf16 (!%p258_p9), %v324_v17, %v323_v16  ;;  %v326_v24 = vld [vmem:[%s3338_s3 + $0x78] sm:$0xff] (!%p258_p9)  ;;  %v2684_v25 = vpack.c.bf16 (!%p258_p9), %v322_v22, %v321_v21  ;;  %v327_v27 = vld [vmem:[%s3338_s3 + $0x80] sm:$0xff] (!%p258_p9)  ;;  %v328_v28 = vld [vmem:[%s3338_s3 + $0x88] sm:$0xff] (!%p258_p9)  ;;  %s2256_s23 = sshll.u32 (!%p258_p9), %s295_s22, 4  ;;  %s3295_s23 = int_to_ptr.vmem [resolvable:$true] %s2256_s23 }
  0x13   : > { %v2690_v26 = vpack.c.bf16 (!%p258_p9), %v326_v24, %v325_v23  ;;  %v331_v29 = vld [vmem:[%s3338_s3 + $0xa0] sm:$0xff] (!%p258_p9)  ;;  %v332_v30 = vld [vmem:[%s3338_s3 + $0xa8] sm:$0xff] (!%p258_p9)  ;;  %v2693_v31 = vpack.c.bf16 (!%p258_p9), %v328_v28, %v327_v27  ;;  %v329_v33 = vld [vmem:[%s3338_s3 + $0x90] sm:$0xff] (!%p258_p9) }
  0x14   : > { %2673 = vmatpush3.bf16.msra.mxu0 (!%p258_p9), %v2672_v12  ;;  %v2699_v32 = vpack.c.bf16 (!%p258_p9), %v332_v30, %v331_v29  ;;  %v330_v34 = vld [vmem:[%s3338_s3 + $0x98] sm:$0xff] (!%p258_p9)  ;;  %v333_v35 = vld [vmem:[%s3338_s3 + $0xb0] sm:$0xff] (!%p258_p9)  ;;  %v335_v39 = vld [vmem:[%s3338_s3 + $0xc0] sm:$0xff] (!%p258_p9) }
  0x15   : > { %s297_s15 = scalar_select %p296_p10, %s2927_s28, 1  ;;  %2679 = vmatpush3.bf16.msra.mxu1 %v2678_v13  ;;  %2680 = vmatprep.subr.bf16.mxu0 %v2862_v3  ;;  %v334_v36 = vld [vmem:[%s3338_s3 + $0xb8] sm:$0xff]  ;;  %v2696_v37 = vpack.c.bf16 %v330_v34, %v329_v33  ;;  %v336_v40 = vld [vmem:[%s3338_s3 + $0xc8] sm:$0xff]  ;;  %v339_v41 = vld [vmem:[%s3338_s3 + $0xe0] sm:$0xff] }
  0x16   : > { %2686 = vmatprep.subr.bf16.mxu1 %v2862_v3  ;;  %v2702_v38 = vpack.c.bf16 %v334_v36, %v333_v35  ;;  %v340_v42 = vld [vmem:[%s3338_s3 + $0xe8] sm:$0xff]  ;;  %v2705_v44 = vpack.c.bf16 %v336_v40, %v335_v39  ;;  %v337_v46 = vld [vmem:[%s3338_s3 + $0xd0] sm:$0xff]  ;;  %v338_v47 = vld [vmem:[%s3338_s3 + $0xd8] sm:$0xff]  ;;  %s2865_s28 = smov [#allocation2]  }
  0x17   : > { %s2994_s20 = sshll.u32 %s297_s15, 3  ;;  %v2711_v45 = vpack.c.bf16 %v340_v42, %v339_v41  ;;  %v341_v48 = vld [vmem:[%s3338_s3 + $0xf0] sm:$0xff]  ;;  %v342_v49 = vld [vmem:[%s3338_s3 + $0xf8] sm:$0xff]  ;;  %v2708_v50 = vpack.c.bf16 %v338_v47, %v337_v46  ;;  %v343_v52 = vld [vmem:[%s3338_s3 + $0x100] sm:$0xff]  ;;  %s2798_s15 = scalar_lea.vmem %s3295_s23, 128 }
  0x18   : > { %s299_s13 = scalar_lea.vmem %s3335_s0, %s2994_s20  ;;  %s303_s14 = scalar_lea.vmem %s3336_s1, %s2994_s20  ;;  %v2714_v51 = vpack.c.bf16 %v342_v49, %v341_v48  ;;  %v344_v53 = vld [vmem:[%s3338_s3 + $0x108] sm:$0xff]  ;;  %v347_v54 = vld [vmem:[%s3338_s3 + $0x120] sm:$0xff]  ;;  %v345_v58 = vld [vmem:[%s3338_s3 + $0x110] sm:$0xff] }
  0x19   : > { %v308_v18 = vld [vmem:[%s299_s13] sm:$0xff]  ;;  %v348_v55 = vld [vmem:[%s3338_s3 + $0x128] sm:$0xff]  ;;  %v2717_v56 = vpack.c.bf16 %v344_v53, %v343_v52  ;;  %v346_v59 = vld [vmem:[%s3338_s3 + $0x118] sm:$0xff]  ;;  %s307_s29 = scalar_lea.vmem %s3337_s2, %s2994_s20  ;;  %s2243_s13 = scalar_lea.sflag [#allocation3], %s293_s17 }
  0x1a   : > { %2485 = vmatmul.mubr.msk.f32.vlgmr.msra.gmra.mrb[0].mxu0 %vm443_vm1, %v308_v18  ;;  %2496 = vmatmul.mubr.msk.f32.vlgmr.msra.gmra.mrb[0].mxu1 %vm443_vm1, %v308_v18  ;;  %v309_v43 = vld [vmem:[%s303_s14] sm:$0xff]  ;;  %v2723_v57 = vpack.c.bf16 %v348_v55, %v347_v54  ;;  %v349_v60 = vld [vmem:[%s3338_s3 + $0x130] sm:$0xff]  ;;  %v2720_v61 = vpack.c.bf16 %v346_v59, %v345_v58  ;;  %v350_v62 = vld [vmem:[%s3338_s3 + $0x138] sm:$0xff]  ;;  %p2799_p11 = scmp.ne.s32.totalorder %s3295_s23, %s2798_s15  ;;  %s2802_s16 = sshll.u32 %s2865_s28, 4  ;;  %s2803_s16 = int_to_ptr.vmem [resolvable:$false] %s2802_s16 }
  0x1b   : > { %2682 = vmatpush3.bf16.msra.mxu0 %v2681_v19  ;;  %2688 = vmatpush3.bf16.msra.mxu1 %v2687_v20  ;;  %v2726_v63 = vpack.c.bf16 %v350_v62, %v349_v60  ;;  %v351_v0 = vld [vmem:[%s3338_s3 + $0x140] sm:$0xff]  ;;  %v352_v1 = vld [vmem:[%s3338_s3 + $0x148] sm:$0xff]  ;;  %v353_v8 = vld [vmem:[%s3338_s3 + $0x150] sm:$0xff]  ;;  %s2804_s14 = scalar_lea.vmem %s2803_s16, 256  ;;  %p2805_p0 = scmp.lt.s32.totalorder %s3295_s23, %s2803_s16 }
  0x1c   : > { %2683 = vmatprep.subr.bf16.mxu0 %v2862_v3  ;;  %2689 = vmatprep.subr.bf16.mxu1 %v2862_v3  ;;  %v355_v2 = vld [vmem:[%s3338_s3 + $0x160] sm:$0xff]  ;;  %v2729_v5 = vpack.c.bf16 %v352_v1, %v351_v0  ;;  %v356_v6 = vld [vmem:[%s3338_s3 + $0x168] sm:$0xff]  ;;  %v354_v9 = vld [vmem:[%s3338_s3 + $0x158] sm:$0xff]  ;;  %p2800_p12 = pnand %p2799_p11, %p2944_p5  ;;  %p2806_p1 = scmp.lt.s32.totalorder %s2804_s14, %s2798_s15 }
  0x1d   : > { %2506 = vmatprep.mubr.msk.f32.mxu0 %vm2863_vm0, %v2864_v11  ;;  %2517 = vmatprep.mubr.msk.f32.mxu1 %vm2863_vm0, %v2864_v11  ;;  %v310_v4 = vld [vmem:[%s307_s29] sm:$0xff]  ;;  %v2735_v7 = vpack.c.bf16 %v356_v6, %v355_v2  ;;  %v357_v10 = vld [vmem:[%s3338_s3 + $0x170] sm:$0xff]  ;;  %v2732_v12 = vpack.c.bf16 %v354_v9, %v353_v8  ;;  %v358_v13 = vld [vmem:[%s3338_s3 + $0x178] sm:$0xff] }
  0x1e   : > { %v2738_v14 = vpack.c.bf16 %v358_v13, %v357_v10  ;;  %v2351_v22 = vld [vmem:[%s3339_s4 + $0x4] ss:$0 sm:$0xff]  ;;  %v2352_v23 = vld [vmem:[%s3339_s4 + $0x5] ss:$0 sm:$0xff]  ;;  %v2348_v29 = vld [vmem:[%s3339_s4 + $0x1] ss:$0 sm:$0xff]  ;;  %p2801_p13 = pneg %p2800_p12  ;;  %p2807_p2 = por %p2806_p1, %p2805_p0 }
  0x1f   : > { %2685 = vmatpush3.bf16.msra.mxu0 %v2684_v25  ;;  %2691 = vmatpush3.bf16.msra.mxu1 %v2690_v26  ;;  %v2347_v25 = vld [vmem:[%s3339_s4] ss:$0 sm:$0xff]  ;;  %v2353_v34 = vld [vmem:[%s3339_s4 + $0x6] ss:$0 sm:$0xff]  ;;  %v2354_v35 = vld [vmem:[%s3339_s4 + $0x7] ss:$0 sm:$0xff] }
  0x20   : > { %2692 = vmatprep.subr.bf16.mxu0 %v2862_v3  ;;  %2698 = vmatprep.subr.bf16.mxu1 %v2862_v3  ;;  %v2350_v41 = vld [vmem:[%s3339_s4 + $0x3] ss:$0 sm:$0xff]  ;;  %v2355_v46 = vld [vmem:[%s3339_s4 + $0x8] ss:$0 sm:$0xff]  ;;  %v2356_v47 = vld [vmem:[%s3339_s4 + $0x9] ss:$0 sm:$0xff]  ;;  %p2808_p3 = pnand %p2807_p2, %p2801_p13 }
  0x22   : > { %2507 = vmatmul.mubr.msk.f32.vlgmr.msra.gmra.mrb[2].mxu0 %vm443_vm1, %v308_v18  ;;  %2518 = vmatmul.mubr.msk.f32.vlgmr.msra.gmra.mrb[2].mxu1 %vm443_vm1, %v308_v18 }
  0x23   : > { %2694 = vmatpush3.bf16.msra.mxu0 %v2693_v31  ;;  %2700 = vmatpush3.bf16.msra.mxu1 %v2699_v32 }
  0x24   : > { %2695 = vmatprep.subr.bf16.mxu0 %v2862_v3  ;;  %2701 = vmatprep.subr.bf16.mxu1 %v2862_v3 }
  0x25   : > { %2528 = vmatprep.mubr.msk.f32.mxu0 %vm2863_vm0, %v2864_v11  ;;  %2539 = vmatprep.mubr.msk.f32.mxu1 %vm2863_vm0, %v2864_v11 }
  0x27   : > { %2697 = vmatpush3.bf16.msra.mxu0 %v2696_v37  ;;  %2703 = vmatpush3.bf16.msra.mxu1 %v2702_v38  ;;  %v2349_v37 = vld [vmem:[%s3339_s4 + $0x2] ss:$0 sm:$0xff] }
  0x28   : > { %2704 = vmatprep.subr.bf16.mxu0 %v2862_v3  ;;  %2710 = vmatprep.subr.bf16.mxu1 %v2862_v3 }
  0x2a   : > { %2529 = vmatmul.mubr.msk.f32.vlgmr.msra.gmra.mrb[4].mxu0 %vm443_vm1, %v309_v43  ;;  %2540 = vmatmul.mubr.msk.f32.vlgmr.msra.gmra.mrb[4].mxu1 %vm443_vm1, %v309_v43 }
  0x2b   : > { %2706 = vmatpush3.bf16.msra.mxu0 %v2705_v44  ;;  %2712 = vmatpush3.bf16.msra.mxu1 %v2711_v45 }
  0x2c   : > { %2707 = vmatprep.subr.bf16.mxu0 %v2862_v3  ;;  %2713 = vmatprep.subr.bf16.mxu1 %v2862_v3 }
  0x2d   : > { %2550 = vmatprep.mubr.msk.f32.mxu0 %vm2863_vm0, %v2864_v11  ;;  %2561 = vmatprep.mubr.msk.f32.mxu1 %vm2863_vm0, %v2864_v11 }
  0x2f   : > { %2709 = vmatpush3.bf16.msra.mxu0 %v2708_v50  ;;  %2715 = vmatpush3.bf16.msra.mxu1 %v2714_v51 }
  0x30   : > { %2716 = vmatprep.subr.bf16.mxu0 %v2862_v3  ;;  %2722 = vmatprep.subr.bf16.mxu1 %v2862_v3 }
  0x32   : > { %2551 = vmatmul.mubr.msk.f32.vlgmr.msra.gmra.mrb[6].mxu0 %vm443_vm1, %v309_v43  ;;  %2562 = vmatmul.mubr.msk.f32.vlgmr.msra.gmra.mrb[6].mxu1 %vm443_vm1, %v309_v43 }
  0x33   : > { %2718 = vmatpush3.bf16.msra.mxu0 %v2717_v56  ;;  %2724 = vmatpush3.bf16.msra.mxu1 %v2723_v57 }
  0x34   : > { %2719 = vmatprep.subr.bf16.mxu0 %v2862_v3  ;;  %2725 = vmatprep.subr.bf16.mxu1 %v2862_v3 }
  0x35   : > { %2572 = vmatprep.mubr.msk.f32.mxu0 %vm2863_vm0, %v2864_v11  ;;  %2583 = vmatprep.mubr.msk.f32.mxu1 %vm2863_vm0, %v2864_v11 }
  0x37   : > { %2721 = vmatpush3.bf16.msra.mxu0 %v2720_v61  ;;  %2727 = vmatpush3.bf16.msra.mxu1 %v2726_v63 }
  0x38   : > { %2728 = vmatprep.subr.bf16.mxu0 %v2862_v3  ;;  %2734 = vmatprep.subr.bf16.mxu1 %v2862_v3 }
  0x3a   : > { %2573 = vmatmul.mubr.msk.f32.vlgmr.msra.gmra.mrb[8].mxu0 %vm443_vm1, %v310_v4  ;;  %2584 = vmatmul.mubr.msk.f32.vlgmr.msra.gmra.mrb[8].mxu1 %vm443_vm1, %v310_v4 }
  0x3b   : > { %2730 = vmatpush3.bf16.msra.mxu0 %v2729_v5  ;;  %2736 = vmatpush3.bf16.msra.mxu1 %v2735_v7 }
  0x3c   : > { %2731 = vmatprep.subr.bf16.mxu0 %v2862_v3  ;;  %2737 = vmatprep.subr.bf16.mxu1 %v2862_v3 }
  0x3d   : > { %2594 = vmatprep.mubr.msk.f32.mxu0 %vm2863_vm0, %v2864_v11  ;;  %2605 = vmatprep.mubr.msk.f32.mxu1 %vm2863_vm0, %v2864_v11 }
  0x3f   : > { %2733 = vmatpush3.bf16.msra.mxu0 %v2732_v12  ;;  %2739 = vmatpush3.bf16.msra.mxu1 %v2738_v14 }
  0x40   : > { %2608 = vmatprep.subr.mxu0 %v2864_v11  ;;  %2613 = vmatprep.subr.mxu1 %v2864_v11 }
  0x42   : > { %2595 = vmatmul.mubr.msk.f32.vlgmr.msra.gmra.mrb[10].mxu0 %vm443_vm1, %v310_v4  ;;  %2606 = vmatmul.mubr.msk.f32.vlgmr.msra.gmra.mrb[10].mxu1 %vm443_vm1, %v310_v4 }
  0x43   : > { %2610 = vmatprep.mubr.msk.f32.mxu0 %vm2863_vm0, %v2864_v11  ;;  %2615 = vmatprep.mubr.msk.f32.mxu1 %vm2863_vm0, %v2864_v11 }
  0xed   : > { %v513_v3 = vpop.f32.mrb[0].mxu0  ;;  %v583_v16 = vpop.f32.mrb[0].mxu1 }
  0xee   : > { %v2486_v15 = vpop.f32.mrb[1].mxu0  ;;  %v2497_v17 = vpop.f32.mrb[1].mxu1  ;;  %v514_v32 = vadd.f32 %v2347_v25, %v513_v3  ;;  %v584_v33 = vadd.f32 %v2348_v29, %v583_v16 }
  0xf5   : > { %v653_v18 = vpop.f32.mrb[2].mxu0  ;;  %v723_v20 = vpop.f32.mrb[2].mxu1 }
  0xf6   : > { %v2508_v19 = vpop.f32.mrb[3].mxu0  ;;  %v2519_v21 = vpop.f32.mrb[3].mxu1  ;;  %v654_v44 = vadd.f32 %v2349_v37, %v653_v18  ;;  %v724_v45 = vadd.f32 %v2350_v41, %v723_v20 }
  0xfd   : > { %v796_v24 = vpop.f32.mrb[4].mxu0  ;;  %v866_v27 = vpop.f32.mrb[4].mxu1 }
  0xfe   : > { %v797_v26 = vadd.f32 %v2351_v22, %v796_v24  ;;  %v2530_v28 = vpop.f32.mrb[5].mxu0  ;;  %v867_v30 = vadd.f32 %v2352_v23, %v866_v27  ;;  %v2541_v31 = vpop.f32.mrb[5].mxu1 }
 0x100   : > { %2609 = vmatpush3.xpose.msk.msra.mxu0 %vm1293_vm2, %v797_v26  ;;  %2614 = vmatpush3.xpose.msk.msra.mxu1 %vm1293_vm2, %v867_v30  ;;  %v2357_v30 = vld [vmem:[%s3339_s4 + $0xa] ss:$0 sm:$0xff] }
 0x101   : > { %2618 = vmatprep.subr.mxu0 %v2864_v11  ;;  %2623 = vmatprep.subr.mxu1 %v2864_v11 }
 0x103   : > { %2611 = vmatmul.mubr.msk.f32.vlgmr.msra.gmra.mrb[12].mxu0 %vm1293_vm2, %v514_v32  ;;  %2616 = vmatmul.mubr.msk.f32.vlgmr.msra.gmra.mrb[12].mxu1 %vm1293_vm2, %v584_v33 }
 0x104   : > { %2620 = vmatprep.mubr.msk.f32.mxu0 %vm2863_vm0, %v2864_v11  ;;  %2625 = vmatprep.mubr.msk.f32.mxu1 %vm2863_vm0, %v2864_v11 }
 0x105   : > { %v936_v36 = vpop.f32.mrb[6].mxu0  ;;  %v1006_v39 = vpop.f32.mrb[6].mxu1 }
 0x106   : > { %v937_v38 = vadd.f32 %v2353_v34, %v936_v36  ;;  %v2552_v40 = vpop.f32.mrb[7].mxu0  ;;  %v1007_v42 = vadd.f32 %v2354_v35, %v1006_v39  ;;  %v2563_v43 = vpop.f32.mrb[7].mxu1  ;;  %v2358_v35 = vld [vmem:[%s3339_s4 + $0xb] ss:$0 sm:$0xff] }
 0x107   : > { %v1934_v43 = vld [vmem:[%s3340_s5] sm:$0xff] }
 0x108   : > { %2619 = vmatpush3.xpose.msk.msra.mxu0 %vm1293_vm2, %v937_v38  ;;  %2624 = vmatpush3.xpose.msk.msra.mxu1 %vm1293_vm2, %v1007_v42 }
 0x109   : > { %2628 = vmatprep.subr.mxu0 %v2864_v11  ;;  %2633 = vmatprep.subr.mxu1 %v2864_v11 }
 0x10b   : > { %2621 = vmatmul.mubr.msk.f32.vlgmr.msra.gmra.mrb[14].mxu0 %vm1293_vm2, %v654_v44  ;;  %2626 = vmatmul.mubr.msk.f32.vlgmr.msra.gmra.mrb[14].mxu1 %vm1293_vm2, %v724_v45  ;;  %v1935_v44 = vld [vmem:[%s3340_s5 + $0x8] sm:$0xff]  ;;  %v1936_v45 = vld [vmem:[%s3340_s5 + $0x10] sm:$0xff] }
 0x10c   : > { %2630 = vmatprep.mubr.msk.f32.mxu0 %vm2863_vm0, %v2864_v11  ;;  %2635 = vmatprep.mubr.msk.f32.mxu1 %vm2863_vm0, %v2864_v11 }
 0x10d   : > { %v1079_v48 = vpop.f32.mrb[8].mxu0  ;;  %v1149_v51 = vpop.f32.mrb[8].mxu1 }
 0x10e   : > { %v1080_v49 = vadd.f32 %v2355_v46, %v1079_v48  ;;  %v2574_v50 = vpop.f32.mrb[9].mxu0  ;;  %v1150_v52 = vadd.f32 %v2356_v47, %v1149_v51  ;;  %v2585_v53 = vpop.f32.mrb[9].mxu1  ;;  %v1937_v48 = vld [vmem:[%s3340_s5 + $0x18] sm:$0xff] }
 0x110   : > { %2629 = vmatpush3.msra.mxu0 %v1080_v49  ;;  %2634 = vmatpush3.msra.mxu1 %v1150_v52 }
 0x111   : > { %2638 = vmatprep.subr.mxu0 %v2864_v11  ;;  %2643 = vmatprep.subr.mxu1 %v2864_v11 }
 0x115   : > { %v1219_v54 = vpop.f32.mrb[10].mxu0  ;;  %v3232_v55 = vpop.f32.mrb[10].mxu1 }
 0x116   : > { %v2596_v56 = vpop.f32.mrb[11].mxu0  ;;  %v2607_v57 = vpop.f32.mrb[11].mxu1  ;;  %v1220_v34 = vadd.f32 %v2357_v30, %v1219_v54  ;;  %v1290_v38 = vadd.f32 %v2358_v35, %v3232_v55 }
 0x1d6   : > { %v1366_v58 = vpop.f32.mrb[12].mxu0  ;;  %v1442_v59 = vpop.f32.mrb[12].mxu1 }
 0x1d7   : > { %v2612_v60 = vpop.f32.mrb[13].mxu0  ;;  %v1598_v61 = vsel %vm1293_vm2, %v1366_v58, -inf  ;;  %v2617_v62 = vpop.f32.mrb[13].mxu1  ;;  %v1601_v63 = vsel %vm1293_vm2, %v1442_v59, -inf }
 0x1d8   : > { %1599 = vmax.xlane.f32.xlu0 %v1598_v61 }
 0x1dc   : > { %1602 = vmax.xlane.f32.xlu0 %v1601_v63  ;;  %v2387_v63 = vld [vmem:[%s3341_s6] ss:$0 sm:$0xff] }
 0x1de   : > { %v1518_v0 = vpop.f32.mrb[14].mxu0  ;;  %v1594_v1 = vpop.f32.mrb[14].mxu1 }
 0x1df   : > { %v2622_v2 = vpop.f32.mrb[15].mxu0  ;;  %v1604_v4 = vsel %vm1293_vm2, %v1518_v0, -inf  ;;  %v2627_v5 = vpop.f32.mrb[15].mxu1  ;;  %v1607_v6 = vsel %vm1293_vm2, %v1594_v1, -inf }
 0x1e0   : > { %1605 = vmax.xlane.f32.xlu1 %v1604_v4 }
 0x1e4   : > { %1608 = vmax.xlane.f32.xlu1 %v1607_v6 }
 0x265   : > { %v1600_v7 = vpop.xlane.xlu0 %1599 }
 0x266   : > { %v1610_v8 = vsub.f32 %v1366_v58, %v1600_v7 }
 0x268   : > { %v1614_v9 = vmul.f32 1.442695, %v1610_v8 }
 0x269   : > { %v1603_v10 = vpop.xlane.xlu0 %1602 }
 0x26a   : > { %2782 = vpow2.f32 %v1614_v9  ;;  %v1611_v12 = vsub.f32 %v1442_v59, %v1603_v10 }
 0x26c   : > { %v1616_v13 = vmul.f32 1.442695, %v1611_v12 }
 0x26d   : > { %v1606_v14 = vpop.xlane.xlu1 %1605 }
 0x26e   : > { %2784 = vpow2.f32 %v1616_v13  ;;  %v1612_v3 = vsub.f32 %v1518_v0, %v1606_v14 }
 0x270   : > { %v1618_v15 = vmul.f32 1.442695, %v1612_v3 }
 0x271   : > { %v1609_v16 = vpop.xlane.xlu1 %1608 }
 0x272   : > { %2786 = vpow2.f32 %v1618_v15  ;;  %v1613_v17 = vsub.f32 %v1594_v1, %v1609_v16 }
 0x274   : > { %v2783_v18 = vpop.eup %2782  ;;  %v1620_v19 = vmul.f32 1.442695, %v1613_v17 }
 0x275   : > { %v1622_v20 = vsel %vm1293_vm2, %v2783_v18, 0.0 }
 0x276   : > { %2788 = vpow2.f32 %v1620_v19  ;;  %1623 = vadd.xlane.f32.xlu0 %v1622_v20 }
 0x278   : > { %v2785_v21 = vpop.eup %2784 }
 0x279   : > { %v1625_v22 = vsel %vm1293_vm2, %v2785_v21, 0.0 }
 0x27a   : > { %1626 = vadd.xlane.f32.xlu1 %v1625_v22 }
 0x27c   : > { %v2787_v23 = vpop.eup %2786 }
 0x27d   : > { %v1628_v24 = vsel %vm1293_vm2, %v2787_v23, 0.0 }
 0x27e   : > { %1629 = vadd.xlane.f32.xlu0 %v1628_v24 }
 0x280   : > { %v2789_v25 = vpop.eup %2788 }
 0x281   : > { %v1631_v26 = vsel %vm1293_vm2, %v2789_v25, 0.0 }
 0x282   : > { %1632 = vadd.xlane.f32.xlu1 %v1631_v26 }
 0x303   : > { %v1624_v27 = vpop.xlane.xlu0 %1623 }
 0x304   : > { %2790 = vrcp.f32 %v1624_v27 }
 0x307   : > { %v1627_v28 = vpop.xlane.xlu1 %1626 }
 0x308   : > { %2792 = vrcp.f32 %v1627_v28 }
 0x30b   : > { %v1630_v29 = vpop.xlane.xlu0 %1629 }
 0x30c   : > { %2794 = vrcp.f32 %v1630_v29 }
 0x30e   : > { %v2791_v31 = vpop.eup %2790 }
 0x30f   : > { %v1638_v32 = vmul.f32 %v2791_v31, %v2783_v18  ;;  %v1633_v33 = vpop.xlane.xlu1 %1632 }
 0x310   : > { %2796 = vrcp.f32 %v1633_v33 }
 0x311   : > { %2631 = vmatmul.mubr.msk.f32.vlgmr.msra.gmra.mrb[16].mxu0 %vm1293_vm2, %v1638_v32 }
 0x312   : > { %v2793_v36 = vpop.eup %2792  ;;  %2639 = vmatpush3.msra.mxu0 %v1220_v34  ;;  %2640 = vmatprep.mubr.msk.f32.mxu0 %vm2863_vm0, %v2864_v11 }
 0x313   : > { %v1639_v37 = vmul.f32 %v2793_v36, %v2785_v21  ;;  %2648 = vmatprep.subr.mxu0 %v2864_v11 }
 0x315   : > { %2636 = vmatmul.mubr.msk.f32.vlgmr.msra.gmra.mrb[16].mxu1 %vm1293_vm2, %v1639_v37 }
 0x316   : > { %v2795_v39 = vpop.eup %2794  ;;  %2644 = vmatpush3.msra.mxu1 %v1290_v38  ;;  %2645 = vmatprep.mubr.msk.f32.mxu1 %vm2863_vm0, %v2864_v11 }
 0x317   : > { %v1640_v40 = vmul.f32 %v2795_v39, %v2787_v23  ;;  %2653 = vmatprep.subr.mxu1 %v2864_v11 }
 0x319   : > { %2641 = vmatmul.mubr.msk.f32.vlgmr.msra.gmra.mrb[18].mxu0 %vm1293_vm2, %v1640_v40 }
 0x31a   : > { %v2797_v41 = vpop.eup %2796  ;;  %2650 = vmatprep.mubr.msk.f32.mxu0 %vm2863_vm0, %v2864_v11  ;;  %2649 = vmatpush3.msra.mxu0 %v1934_v43 }
 0x31b   : > { %v1641_v42 = vmul.f32 %v2797_v41, %v2789_v25  ;;  %2658 = vmatprep.subr.mxu0 %v2864_v11 }
 0x31d   : > { %2646 = vmatmul.mubr.msk.f32.vlgmr.msra.gmra.mrb[18].mxu1 %vm1293_vm2, %v1641_v42 }
 0x31e   : > { %2655 = vmatprep.mubr.msk.f32.mxu1 %vm2863_vm0, %v2864_v11  ;;  %2654 = vmatpush3.msra.mxu1 %v1935_v44 }
 0x31f   : > { %2663 = vmatprep.subr.mxu1 %v2864_v11 }
 0x3e4   : > { %v1711_v46 = vpop.f32.mrb[16].mxu0 }
 0x3e5   : > { %v2632_v47 = vpop.f32.mrb[17].mxu0  ;;  %2651 = vmatmul.mubr.msk.f32.vlgmr.msra.gmra.mrb[20].mxu0 %vm1293_vm2, %v1711_v46 }
 0x3e6   : > { %2659 = vmatpush3.msra.mxu0 %v1936_v45  ;;  %2660 = vmatprep.mubr.msk.f32.mxu0 %vm2863_vm0, %v2864_v11 }
 0x3e8   : > { %v1784_v49 = vpop.f32.mrb[16].mxu1 }
 0x3e9   : > { %v2637_v50 = vpop.f32.mrb[17].mxu1  ;;  %2656 = vmatmul.mubr.msk.f32.vlgmr.msra.gmra.mrb[20].mxu1 %vm1293_vm2, %v1784_v49 }
 0x3ea   : > { %2664 = vmatpush3.msra.mxu1 %v1937_v48  ;;  %2665 = vmatprep.mubr.msk.f32.mxu1 %vm2863_vm0, %v2864_v11 }
 0x3ec   : > { %v1857_v51 = vpop.f32.mrb[18].mxu0 }
 0x3ed   : > { %v2642_v52 = vpop.f32.mrb[19].mxu0  ;;  %2661 = vmatmul.mubr.msk.f32.vlgmr.msra.gmra.mrb[22].mxu0 %vm1293_vm2, %v1857_v51 }
 0x3f0   : > { %v1930_v53 = vpop.f32.mrb[18].mxu1 }
 0x3f1   : > { %v2647_v54 = vpop.f32.mrb[19].mxu1  ;;  %2666 = vmatmul.mubr.msk.f32.vlgmr.msra.gmra.mrb[22].mxu1 %vm1293_vm2, %v1930_v53 }
 0x4b8   : > { %v2007_v55 = vpop.f32.mrb[20].mxu0 }
 0x4b9   : > { %v2652_v56 = vpop.f32.mrb[21].mxu0 }
 0x4bc   : > { %v2080_v57 = vpop.f32.mrb[20].mxu1 }
 0x4bd   : > { %v2230_v58 = vadd.f32 %v2080_v57, %v2007_v55  ;;  %v2657_v59 = vpop.f32.mrb[21].mxu1 }
 0x4c0   : > { %v2153_v60 = vpop.f32.mrb[22].mxu0 }
 0x4c1   : > { %v2231_v61 = vadd.f32 %v2230_v58, %v2153_v60  ;;  %v2662_v11 = vpop.f32.mrb[23].mxu0 }
 0x4c4   : > { %v2226_v62 = vpop.f32.mrb[22].mxu1 }
 0x4c5   : > { %v2232_v0 = vadd.f32 %v2231_v61, %v2226_v62  ;;  %v2667_v1 = vpop.f32.mrb[23].mxu1 }
 0x4c7   : > { %v2240_v2 = vadd.f32 %v2387_v63, %v2232_v0 }
 0x4c9   : > { %2241 = vst [vmem:[%s295_s22] sm:$0xff] %v2240_v2 }
 0x4ca   : > { %2811 = shalt.err (!%p2808_p3)
}
 0x4cb   : > { %s2812_s17 = scalar_lea.hbm %s3293_s9, 128  ;;  %s2816_s19 = scalar_lea.hbm %s3342_s7, 256 }
 0x4cc   : > { %p2813_p4 = scmp.ne.s32.totalorder %s3293_s9, %s2812_s17  ;;  %p2817_p9 = scmp.lt.u32.totalorder %s3293_s9, %s3342_s7 }
 0x4cd   : > { %p2818_p10 = scmp.lt.u32.totalorder %s2816_s19, %s2812_s17  ;;  %p2820_p12 = scmp.lt.u32.totalorder %s2812_s17, %s3293_s9 }
 0x4ce   : > { %p2814_p7 = pnand %p2813_p4, %p2944_p5 }
 0x4cf   : > { %p2819_p11 = por %p2818_p10, %p2817_p9 }
 0x4d0   : > { %p2815_p8 = pneg %p2814_p7 }
 0x4d1   : > { %p2821_p13 = por %p2820_p12, %p2819_p11 }
 0x4d3   : > { %p2822_p0 = pnand %p2821_p13, %p2815_p8 }
 0x4d5   : > { %2825 = shalt.err (!%p2822_p0)
}
 0x4d6   : > { %2740 = dma.vmem_to_hbm [thread:$0]  (%p2944_p5), %s3295_s23, 128, %s3293_s9, %s2243_s13  }
 0x4d7 PF: > { %p2746_p1 = scmp.ge.s32.totalorder %s2860_s27, 2  ;;  %s2268_s29 = sand.u32 1, %s2848_s24  }
 0x4d8   : > { %s2269_s8 = scalar_lea.sflag [#allocation3], %s2268_s29 }
 0x4d9   : > { %p2743_p2 = pnand %p2746_p1, %p2948_p6 }
 0x4db   : > { %2843 = dma.done.wait (!%p2743_p2), %s2269_s8, 128  }
 0x4dc   : > { %2845 = vsyncadd (!%p2743_p2), %s2269_s8, 4294967168  ;;  %p17_p3 = scmp.ge.s32.totalorder %s2931_s30, 4   ;;  %s3345_s24 = smov %s2852_s25 }
 0x4dd   : > { %s3346_s25 = smov %s2856_s26  ;;  %s3347_s26 = smov %s2942_s10 }
 0x4de   : > { %s3348_s27 = smov %s2931_s30  ;;  %19 = sbr.rel (!%p17_p3) target bundleno = 3 (0x3), region = 89 }
 0x4e5   :  { %2274 = vsyncpa [#allocation3], 1 }
 0x4e6   :  { %2276 = vsyncpa [#allocation3 + $0x1], 1 }

</bundles_post_ra>
